<compile_context>
chip_gen: v5e
topology: v5e:2x2
jax: 0.10.0
libtpu: 0.0.40
codegen_flags: <defaults>
</compile_context>

<pallas_src>
import functools

import jax
import jax.numpy as jnp
from jax import lax
from jax.experimental import pallas as pl
from jax.experimental.pallas import tpu as pltpu


def _rbf_tile_kernel(scales_ref, xi_ref, xj_ref, out_ref, *, n_kernels):
    """One (TM, TN) output tile of sum_k exp(-||x_i - x_j||^2 / (bw * mult_k)).

    scales_ref: SMEM (n_kernels,) f32 holding -1/(bw*mult_k)  (reciprocal hoisted).
    xi_ref:     VMEM (TM, D) row block of X.
    xj_ref:     VMEM (TN, D) column block of X.
    """
    xi = xi_ref[...].astype(jnp.float32)                         # (TM, D)
    xj = xj_ref[...].astype(jnp.float32)                         # (TN, D)

    sq_i = jnp.sum(xi * xi, axis=-1, keepdims=True)              # (TM, 1)
    sq_j = jnp.sum(xj * xj, axis=-1, keepdims=True)              # (TN, 1)

    # A @ B^T on the MXU, contracting on the last dims (no explicit transpose),
    # with the -2 folded into the cheap O(TN*D) operand.
    gram_m2 = lax.dot_general(
        xi, xj * jnp.float32(-2.0),
        dimension_numbers=(((1,), (1,)), ((), ())),
        preferred_element_type=jnp.float32)                      # (TM, TN)

    l2 = jnp.maximum(sq_i + jnp.reshape(sq_j, (1, -1)) + gram_m2, 0.0)

    acc = jnp.zeros_like(l2)
    for k in range(n_kernels):                                   # static unroll
        # scalar multiply + exp only: the divide was hoisted out of the kernel.
        acc = acc + jnp.exp(l2 * scales_ref[k])
    out_ref[...] = acc.astype(out_ref.dtype)
    # TODO(synk): optional further wins per review (power-of-two multiplier trick
    # using E, E^2, sqrt(E); upper-triangle symmetry) not applied to keep the
    # generic-multiplier / generic-N path simple.


def _choose_tile(n, max_tile=512):
    """Largest lane-friendly tile <= max_tile that divides n (full dim if small/ragged)."""
    if n <= max_tile:
        return n
    for t in (512, 256, 128):
        if t <= max_tile and n % t == 0:
            return t
    return n  # ragged N: fall back to a single full block along this axis


def rbf_forward(x, bandwidth_multipliers, bandwidth=None, *, max_tile=512):
    """x: (N, D), bandwidth_multipliers: (n_kernels,) -> (N, N) float32."""
    n, d = x.shape
    n_kernels = bandwidth_multipliers.shape[0]
    xf = x.astype(jnp.float32)

    # Closed-form bandwidth (no N^2 matrix needed):
    #   sum(L2) = 2*N*sum_i ||x_i||^2 - 2*||sum_i x_i||^2
    if bandwidth is None:
        sum_sq = jnp.sum(xf * xf)                # sum_i ||x_i||^2
        col_sum = jnp.sum(xf, axis=0)            # sum_i x_i  (D,)
        sum_l2 = 2.0 * n * sum_sq - 2.0 * jnp.sum(col_sum * col_sum)
        denom = max(n * n - n, 1)                # guard N == 1
        bw = sum_l2 / denom
    else:
        bw = jnp.asarray(bandwidth, jnp.float32)

    # Hoisted reciprocals: kernel does only a scalar multiply + exp.
    neg_inv_scales = (-1.0 / (bw * bandwidth_multipliers.astype(jnp.float32))
                      ).astype(jnp.float32)

    tm = _choose_tile(n, max_tile)
    tn = _choose_tile(n, max_tile)

    kernel = functools.partial(_rbf_tile_kernel, n_kernels=n_kernels)
    return pl.pallas_call(
        kernel,
        out_shape=jax.ShapeDtypeStruct((n, n), jnp.float32),
        grid=(n // tm, n // tn),
        in_specs=[
            pl.BlockSpec(memory_space=pltpu.MemorySpace.SMEM),       # scales
            pl.BlockSpec((tm, d), lambda i, j: (i, 0)),              # X row block
            pl.BlockSpec((tn, d), lambda i, j: (j, 0)),              # X col block
        ],
        out_specs=pl.BlockSpec((tm, tn), lambda i, j: (i, j)),
        compiler_params=pltpu.CompilerParams(
            dimension_semantics=("parallel", "parallel")),
    )(neg_inv_scales, x, x)


def rbf_reference(x, bandwidth_multipliers):
    # Pure-JAX reference mirroring the PyTorch module.
    diff = x[:, None, :] - x[None, :, :]
    l2 = jnp.sum(diff * diff, axis=-1)
    n = x.shape[0]
    bw = jnp.sum(l2) / (n * n - n)
    return jnp.sum(
        jnp.exp(-l2[None, ...] / (bw * bandwidth_multipliers)[:, None, None]),
        axis=0)


if __name__ == "__main__":
    # Module params: n_kernels=5, mul_factor=2.0, bandwidth=None
    n_kernels = 5
    mul_factor = 2.0
    bandwidth_multipliers = (
        mul_factor ** (jnp.arange(n_kernels) - n_kernels // 2)
    ).astype(jnp.float32)  # [0.25, 0.5, 1, 2, 4]

    # Small example input: N=8 samples, D=32 features.
    key = jax.random.PRNGKey(0)
    x = jax.random.normal(key, (8, 32), dtype=jnp.float32)

    out = rbf_forward(x, bandwidth_multipliers)
    out = jax.block_until_ready(out)

    ref = rbf_reference(x, bandwidth_multipliers)
    assert out.shape == (8, 8)
    assert jnp.allclose(out, ref, atol=1e-4, rtol=1e-4), "mismatch vs reference"

    print("KERNEL_OK")
</pallas_src>

<mosaic_0001>
module attributes {stable_mosaic.version = 11 : i64} {
  func.func @_rbf_tile_kernel(%arg0: i32, %arg1: i32, %arg2: memref<5xf32, #tpu.memory_space<smem>>, %arg3: memref<8x32xf32, #tpu.memory_space<vmem>>, %arg4: memref<8x32xf32, #tpu.memory_space<vmem>>, %arg5: memref<8x8xf32, #tpu.memory_space<vmem>>) attributes {dimension_semantics = [#tpu.dimension_semantics<parallel>, #tpu.dimension_semantics<parallel>], iteration_bounds = array<i64: 1, 1>, scalar_prefetch = 0 : i64, scratch_operands = 0 : i64, tpu.core_type = #tpu.core_type<tc>, window_params = [{transform_indices = @transform_0, window_bounds = array<i64: 5>}, {transform_indices = @transform_1, window_bounds = array<i64: 8, 32>}, {transform_indices = @transform_2, window_bounds = array<i64: 8, 32>}, {transform_indices = @transform_3, window_bounds = array<i64: 8, 8>}]} {
    %c0 = arith.constant 0 : index
    %c0_0 = arith.constant 0 : index
    %0 = vector.load %arg3[%c0, %c0_0] : memref<8x32xf32, #tpu.memory_space<vmem>>, vector<8x32xf32>
    %c0_1 = arith.constant 0 : index
    %c0_2 = arith.constant 0 : index
    %1 = vector.load %arg4[%c0_1, %c0_2] : memref<8x32xf32, #tpu.memory_space<vmem>>, vector<8x32xf32>
    %2 = arith.mulf %0, %0 : vector<8x32xf32>
    %cst = arith.constant dense<0.000000e+00> : vector<8xf32>
    %3 = vector.multi_reduction <add>, %2, %cst [1] : vector<8x32xf32> to vector<8xf32>
    %4 = vector.shape_cast %3 : vector<8xf32> to vector<8x1xf32>
    %5 = arith.mulf %1, %1 : vector<8x32xf32>
    %cst_3 = arith.constant dense<0.000000e+00> : vector<8xf32>
    %6 = vector.multi_reduction <add>, %5, %cst_3 [1] : vector<8x32xf32> to vector<8xf32>
    %7 = vector.shape_cast %6 : vector<8xf32> to vector<8x1xf32>
    %cst_4 = arith.constant -2.000000e+00 : f32
    %8 = vector.broadcast %cst_4 : f32 to vector<8x32xf32>
    %9 = arith.mulf %1, %8 : vector<8x32xf32>
    %cst_5 = arith.constant dense<0.000000e+00> : vector<8x8xf32>
    %10 = tpu.matmul %0, %9, %cst_5 {dimension_numbers = #tpu.dot_dimension_numbers<[1], [1], [0], [0], [0, 0, 1, 0], [], []>} : vector<8x32xf32>, vector<8x32xf32>, vector<8x8xf32> -> vector<8x8xf32>
    %11 = vector.shape_cast %7 : vector<8x1xf32> to vector<1x8xf32>
    %12 = vector.broadcast %4 : vector<8x1xf32> to vector<8x8xf32>
    %13 = vector.broadcast %11 : vector<1x8xf32> to vector<8x8xf32>
    %14 = arith.addf %12, %13 : vector<8x8xf32>
    %15 = arith.addf %14, %10 : vector<8x8xf32>
    %cst_6 = arith.constant 0.000000e+00 : f32
    %16 = vector.broadcast %cst_6 : f32 to vector<8x8xf32>
    %17 = arith.maximumf %15, %16 : vector<8x8xf32>
    %cst_7 = arith.constant 0.000000e+00 : f32
    %18 = vector.broadcast %cst_7 : f32 to vector<8x8xf32>
    %c0_8 = arith.constant 0 : index
    %19 = memref.load %arg2[%c0_8] : memref<5xf32, #tpu.memory_space<smem>>
    %20 = vector.broadcast %19 : f32 to vector<8x8xf32>
    %21 = arith.mulf %17, %20 : vector<8x8xf32>
    %22 = math.exp %21 : vector<8x8xf32>
    %23 = arith.addf %18, %22 : vector<8x8xf32>
    %c1 = arith.constant 1 : index
    %24 = memref.load %arg2[%c1] : memref<5xf32, #tpu.memory_space<smem>>
    %25 = vector.broadcast %24 : f32 to vector<8x8xf32>
    %26 = arith.mulf %17, %25 : vector<8x8xf32>
    %27 = math.exp %26 : vector<8x8xf32>
    %28 = arith.addf %23, %27 : vector<8x8xf32>
    %c2 = arith.constant 2 : index
    %29 = memref.load %arg2[%c2] : memref<5xf32, #tpu.memory_space<smem>>
    %30 = vector.broadcast %29 : f32 to vector<8x8xf32>
    %31 = arith.mulf %17, %30 : vector<8x8xf32>
    %32 = math.exp %31 : vector<8x8xf32>
    %33 = arith.addf %28, %32 : vector<8x8xf32>
    %c3 = arith.constant 3 : index
    %34 = memref.load %arg2[%c3] : memref<5xf32, #tpu.memory_space<smem>>
    %35 = vector.broadcast %34 : f32 to vector<8x8xf32>
    %36 = arith.mulf %17, %35 : vector<8x8xf32>
    %37 = math.exp %36 : vector<8x8xf32>
    %38 = arith.addf %33, %37 : vector<8x8xf32>
    %c4 = arith.constant 4 : index
    %39 = memref.load %arg2[%c4] : memref<5xf32, #tpu.memory_space<smem>>
    %40 = vector.broadcast %39 : f32 to vector<8x8xf32>
    %41 = arith.mulf %17, %40 : vector<8x8xf32>
    %42 = math.exp %41 : vector<8x8xf32>
    %43 = arith.addf %38, %42 : vector<8x8xf32>
    %c0_9 = arith.constant 0 : index
    %c0_10 = arith.constant 0 : index
    %44 = vector.load %arg5[%c0_9, %c0_10] : memref<8x8xf32, #tpu.memory_space<vmem>>, vector<8x8xf32>
    tpu.vector_store %arg5[%c0_9, %c0_10], %43 {strides = array<i32>} : memref<8x8xf32, #tpu.memory_space<vmem>>, vector<8x8xf32>,
    return
  }
  func.func @transform_0(%arg0: i32, %arg1: i32) -> i32 {
    %c0_i32 = arith.constant 0 : i32
    %c0_i32_0 = arith.constant 0 : i32
    return %c0_i32 : i32
  }
  func.func @transform_1(%arg0: i32, %arg1: i32) -> (i32, i32) {
    %c0_i32 = arith.constant 0 : i32
    %c0_i32_0 = arith.constant 0 : i32
    return %arg0, %c0_i32 : i32, i32
  }
  func.func @transform_2(%arg0: i32, %arg1: i32) -> (i32, i32) {
    %c0_i32 = arith.constant 0 : i32
    %c0_i32_0 = arith.constant 0 : i32
    return %arg1, %c0_i32 : i32, i32
  }
  func.func @transform_3(%arg0: i32, %arg1: i32) -> (i32, i32) {
    %c0_i32 = arith.constant 0 : i32
    return %arg0, %arg1 : i32, i32
  }
}

</mosaic_0001>

<bundles_post_ra>
// kernel: tpu_custom_call.1
= control target key start
LH: loop header
LB: loop body
LE: loop exit
PB: predicated region body
PF: predicated region fallthrough
CT: control target
= control target key end

     0   :  { %8 = vsyncpa [#allocation5], 0  ;;  %s313_s0 = inlined_call_operand.hbm [shape: f32[5], index: 0, kind: input, shape index: {}]   ;;  %s314_s1 = inlined_call_operand.hbm [shape: f32[8,32], index: 1, kind: input, shape index: {}]   ;;  %s315_s2 = inlined_call_operand.hbm [shape: f32[8,32], index: 2, kind: input, shape index: {}]   ;;  %s316_s3 = inlined_call_operand.hbm [shape: f32[8,8], index: 3, kind: output, shape index: {}]  }
   0x1   :  { %9 = vsyncpa [#allocation3], 0 }
   0x2   :  { %10 = vsyncpa [#allocation8], 0 }
   0x3   :  { %11 = vsyncpa [#allocation4], 0  ;;  %s17_s14 = sshll.u32 %s313_s0, 4  ;;  %s26_s17 = sshll.u32 %s314_s1, 4  ;;  %s18_s14 = int_to_ptr.hbm [resolvable:$true] %s17_s14  ;;  %s27_s17 = int_to_ptr.hbm [resolvable:$true] %s26_s17 }
   0x4   :  { %s277_s18 = smov [#allocation2]   ;;  %s278_s19 = smov [#allocation6]  }
   0x5   :  { %20 = dma.hbm_to_smem %s18_s14, 16, %s277_s18, [#allocation5]  }
   0x6   :  { %s28_s20 = sshll.u32 %s278_s19, 4  ;;  %s37_s23 = sshll.u32 %s315_s2, 4  ;;  %s29_s20 = int_to_ptr.vmem [resolvable:$true] %s28_s20  ;;  %s38_s23 = int_to_ptr.hbm [resolvable:$true] %s37_s23 }
   0x7   :  { %31 = dma.hbm_to_vmem [thread:$0]  %s27_s17, 128, %s29_s20, [#allocation3]  }
   0x8   :  { %s279_s24 = smov [#allocation7]  }
   0x9   :  { %s39_s25 = sshll.u32 %s279_s24, 4  ;;  %s40_s25 = int_to_ptr.vmem [resolvable:$true] %s39_s25 }
   0xa   :  { %42 = dma.hbm_to_vmem [thread:$0]  %s38_s23, 128, %s40_s25, [#allocation8]  }
   0xb   :  { %269 = dma.done.wait [#allocation5], 16  }
   0xc   :  { %270 = vsyncadd [#allocation5], 4294967280 }
   0xd   :  { %271 = dma.done.wait [#allocation3], 128  }
   0xe   :  { %272 = vsyncadd [#allocation3], 4294967168 }
   0xf   :  { %273 = dma.done.wait [#allocation8], 128  }
  0x10   :  { %274 = vsyncadd [#allocation8], 4294967168 }
  0x11   :  { %55 = sfence }
  0x12   :  { %v57_v0 = vld [vmem:[#allocation7] sm:$0xff]  ;;  %vm59_vm0 = vcmask 261120   ;;  %v56_v4 = vld [vmem:[#allocation6] sm:$0xff]  ;;  %v95_v8 = vlaneseq  ;;  %s114_s0 = sld [smem:[#allocation2]]  ;;  %s280_s28 = smov [#allocation9]   ;;  %vm144_vm1 = vcmask 64512  }
  0x13   :  { %v67_v1 = vmul.f32 -2.0, %v57_v0  ;;  %v63_v2 = vmul.f32 %v57_v0, %v57_v0  ;;  %v58_v5 = vmul.f32 %v56_v4, %v56_v4  ;;  %s167_s1 = sld [smem:[#allocation2 + $0x1]]  ;;  %s151_s29 = sshll.u32 %s280_s28, 4  ;;  %s152_s29 = int_to_ptr.vmem [resolvable:$true] %s151_s29 }
  0x14   :  { %v96_v9 = vand.u32 127, %v95_v8  ;;  %s168_s2 = sld [smem:[#allocation2 + $0x2]]  ;;  %s153_s5 = sshll.u32 %s316_s3, 4  ;;  %s154_s5 = int_to_ptr.hbm [resolvable:$true] %s153_s5 }
  0x15   :  { %165 = vmatpush.xpose.msk.msra.mxu0 %vm59_vm0, %v67_v1  ;;  %v64_v3 = vsel %vm59_vm0, %v63_v2, 0.0  ;;  %v60_v6 = vsel %vm59_vm0, %v58_v5, 0.0  ;;  %s169_s26 = sld [smem:[#allocation2 + $0x3]] }
  0x16   :  { %65 = vadd.xlane.f32.xlu0 %v64_v3  ;;  %s170_s27 = sld [smem:[#allocation2 + $0x4]] }
  0x18   :  { %166 = vmatmul.msk.f32.vlgmr.msra.gmra.mxu0 %vm59_vm0, %v56_v4  ;;  %v115_v15 = vstv %s114_s0 }
  0x19   :  { %v121_v16 = vstv %s167_s1 }
  0x1a   :  { %v127_v17 = vstv %s168_s2 }
  0x1b   :  { %v133_v19 = vstv %s169_s26 }
  0x1c   :  { %v139_v23 = vstv %s170_s27 }
  0x1e   :  { %61 = vadd.xlane.f32.xlu0 %v60_v6 }
  0x89   :  { %v66_v7 = vpop.xlane.xlu0 %65 }
  0x8a   :  { %v97_v11 = vperm.slane %v66_v7, %v96_v9 }
  0x91   :  { %v62_v10 = vpop.xlane.xlu0 %61 }
  0x92   :  { %v111_v12 = vadd.f32 %v97_v11, %v62_v10 }
  0x95   :  { %v91_v13 = vpop.f32.mrf.mxu0 }
  0x96   :  { %v112_v14 = vadd.f32 %v111_v12, %v91_v13 }
  0x98   :  { %v113_v18 = vmax.f32 %v112_v14, 0.0 }
  0x9a   :  { %v116_v20 = vmul.f32 %v115_v15, %v113_v18  ;;  %v122_v21 = vmul.f32 %v121_v16, %v113_v18  ;;  %v128_v22 = vmul.f32 %v127_v17, %v113_v18  ;;  %v134_v24 = vmul.f32 %v133_v19, %v113_v18 }
  0x9b   :  { %v140_v28 = vmul.f32 %v139_v23, %v113_v18 }
  0x9c   :  { %v117_v25 = vmul.f32 1.442695, %v116_v20  ;;  %v123_v26 = vmul.f32 1.442695, %v122_v21  ;;  %v129_v27 = vmul.f32 1.442695, %v128_v22 }
  0x9d   :  { %v135_v29 = vmul.f32 1.442695, %v134_v24  ;;  %v141_v30 = vmul.f32 1.442695, %v140_v28 }
  0x9e   :  { %175 = vpow2.f32 %v117_v25 }
  0x9f   :  { %177 = vpow2.f32 %v123_v26 }
  0xa0   :  { %179 = vpow2.f32 %v129_v27 }
  0xa1   :  { %181 = vpow2.f32 %v135_v29 }
  0xa2   :  { %183 = vpow2.f32 %v141_v30 }
  0xa4   :  { %v176_v31 = vpop.eup %175 }
  0xa5   :  { %v178_v32 = vpop.eup %177 }
  0xa6   :  { %v125_v33 = vadd.f32 %v178_v32, %v176_v31  ;;  %v180_v34 = vpop.eup %179 }
  0xa7   :  { %v182_v36 = vpop.eup %181 }
  0xa8   :  { %v131_v35 = vadd.f32 %v180_v34, %v125_v33  ;;  %v184_v38 = vpop.eup %183 }
  0xaa   :  { %v137_v37 = vadd.f32 %v182_v36, %v131_v35 }
  0xac   :  { %v143_v39 = vadd.f32 %v184_v38, %v137_v37 }
  0xae   :  { %145 = vst.msk [vmem:[#allocation9] sm:$0xff] %vm144_vm1, %v143_v39 }
  0xaf   :  { %156 = dma.vmem_to_hbm [thread:$0]  %s152_s29, 128, %s154_s5, [#allocation4]  }
  0xb0   :  { %275 = dma.done.wait [#allocation4], 128  }
  0xb1   :  { %276 = vsyncadd [#allocation4], 4294967168 }
  0xb2   :  { %161 = vsyncpa [#allocation3], 1 }
  0xb3   :  { %162 = vsyncpa [#allocation8], 1 }
  0xb4   :  { %163 = vsyncpa [#allocation4], 1 }
  0xb5   :  { %164 = vsyncpa [#allocation5], 1 }

</bundles_post_ra>
